<compile_context>
chip_gen: v5e
topology: v5e:2x2
jax: 0.10.0
libtpu: 0.0.40
codegen_flags: <defaults>
</compile_context>

<pallas_src>
import functools

import jax
import jax.numpy as jnp
from jax import lax
from jax.experimental import pallas as pl
from jax.experimental.pallas import tpu as pltpu

HIDDEN = 128
P_DROP = 0.2


def _round_up(x, m):
    return ((x + m - 1) // m) * m


def _pick_seq_block(s, max_ts=32):
    ts = min(s, max_ts)
    while s % ts:
        ts -= 1
    return ts


# ----------------------------------------------------------------------------
# Dense projection kernel: o = x @ w + b, tiled over (rows, cols).
# Used for both the hoisted input projection and the output projection.
# ----------------------------------------------------------------------------
def _dense_kernel(x_ref, w_ref, b_ref, o_ref):
    o_ref[...] = (
        jnp.dot(x_ref[...], w_ref[...], preferred_element_type=jnp.float32)
        + b_ref[...]
    ).astype(o_ref.dtype)


def _dense(x, w, b, *, use_bf16=True, tn=128):
    """x: (M, K) f32, w: (K, N), b: (N,). Returns (M, N) f32."""
    M, K = x.shape
    N = w.shape[1]
    tm = min(_round_up(M, 8), 256)
    Mp = _round_up(M, tm)
    Np = _round_up(N, tn)

    xp = jnp.pad(x, ((0, Mp - M), (0, 0)))
    wp = jnp.pad(w, ((0, 0), (0, Np - N)))
    bp = jnp.pad(b.reshape(1, N), ((0, 0), (0, Np - N))).astype(jnp.float32)
    if use_bf16:
        xp = xp.astype(jnp.bfloat16)
        wp = wp.astype(jnp.bfloat16)

    out = pl.pallas_call(
        _dense_kernel,
        out_shape=jax.ShapeDtypeStruct((Mp, Np), jnp.float32),
        grid=(Mp // tm, Np // tn),
        in_specs=[
            pl.BlockSpec((tm, K), lambda i, j: (i, 0)),
            pl.BlockSpec((K, tn), lambda i, j: (0, j)),
            pl.BlockSpec((1, tn), lambda i, j: (0, j)),
        ],
        out_specs=pl.BlockSpec((tm, tn), lambda i, j: (i, j)),
        compiler_params=pltpu.CompilerParams(
            dimension_semantics=("parallel", "parallel")),
    )(xp, wp, bp)
    return out[:M, :N]


# ----------------------------------------------------------------------------
# Recurrence kernel: h_t = tanh(g_t + h_{t-1} @ W_hh^T) with h carried in
# VMEM scratch; in-kernel fori_loop over a seq block, grid over seq blocks.
# ----------------------------------------------------------------------------
def _rnn_kernel(g_ref, h0_ref, whh_ref, hall_ref, hn_ref, h_scratch):
    blk = pl.program_id(0)

    @pl.when(blk == 0)
    def _():
        h_scratch[...] = h0_ref[...]

    ts = g_ref.shape[0]

    def step(t, h):
        h_new = jnp.tanh(
            g_ref[t]
            + jnp.dot(h, whh_ref[...], preferred_element_type=jnp.float32))
        hall_ref[t] = h_new
        return h_new

    h_last = lax.fori_loop(0, ts, step, h_scratch[...], unroll=(ts <= 16))
    h_scratch[...] = h_last

    @pl.when(blk == pl.num_programs(0) - 1)
    def _():
        hn_ref[...] = h_last


def _recurrence(g, h0, whh_t, *, max_ts=32):
    S, B, H = g.shape
    ts = _pick_seq_block(S, max_ts)
    nblk = S // ts
    h_all, h_n = pl.pallas_call(
        _rnn_kernel,
        out_shape=(
            jax.ShapeDtypeStruct((S, B, H), jnp.float32),
            jax.ShapeDtypeStruct((B, H), jnp.float32),
        ),
        grid=(nblk,),
        in_specs=[
            pl.BlockSpec((ts, B, H), lambda i: (i, 0, 0)),   # hoisted gates g
            pl.BlockSpec((B, H), lambda i: (0, 0)),          # h0
            pl.BlockSpec((H, H), lambda i: (0, 0)),          # W_hh^T
        ],
        out_specs=(
            pl.BlockSpec((ts, B, H), lambda i: (i, 0, 0)),   # all hidden states
            pl.BlockSpec((B, H), lambda i: (0, 0)),          # final hidden
        ),
        scratch_shapes=[pltpu.VMEM((B, H), jnp.float32)],
        compiler_params=pltpu.CompilerParams(
            dimension_semantics=("arbitrary",)),
    )(g, h0, whh_t)
    return h_all, h_n


# ----------------------------------------------------------------------------
# Forward pass matching TangShiRNN.forward
# ----------------------------------------------------------------------------
@functools.partial(jax.jit, static_argnames=("train",))
def tangshi_forward(params, inputs, hidden, dropout_key, train=True):
    """inputs: (B, S) int32 token ids; hidden: (1, B, 128).
    Returns (logits (S, B, V), hidden (1, B, 128)) like the PyTorch module
    (output.squeeze() is a no-op for S > 1 and B > 1)."""
    B, S = inputs.shape
    V, H = params["ebd"].shape

    # Embedding gather, then time-major like embed.transpose(0, 1).
    embed = jnp.take(params["ebd"], inputs, axis=0)        # (B, S, H)
    embed = jnp.transpose(embed, (1, 0, 2))                # (S, B, H)

    # F.dropout(p=0.2) (training=True default) hoisted out of the recurrence.
    # TODO(synk): cannot bit-match PyTorch's RNG stream; uses jax.random.
    if train:
        keep = jax.random.bernoulli(dropout_key, 1.0 - P_DROP, embed.shape)
        embed = embed * keep.astype(embed.dtype) * (1.0 / (1.0 - P_DROP))

    # Hoisted input projection: G = embed @ W_ih^T + (b_ih + b_hh), batched
    # over all S*B rows (no sequential dependence).
    g = _dense(embed.reshape(S * B, H), params["w_ih"].T,
               params["b_ih"] + params["b_hh"])
    g = g.reshape(S, B, H)

    # Sequential Elman recurrence: h_t = tanh(g_t + h_{t-1} @ W_hh^T).
    h_all, h_n = _recurrence(g, hidden.reshape(B, H), params["w_hh"].T)

    # Hoisted output projection over all timesteps (vocab padded to 128
    # inside _dense, padding sliced off).
    logits = _dense(h_all.reshape(S * B, H), params["out_w"].T,
                    params["out_b"])
    logits = logits.reshape(S, B, V)

    # NOTE: the module's second F.dropout(output) is assigned to `embed` and
    # never used downstream, so it is dead code and intentionally omitted.
    return logits, h_n.reshape(1, B, H)


def init_params(key, vocab_size, hidden=HIDDEN):
    """Deterministic init mimicking PyTorch defaults (shapes match
    nn.Embedding / nn.RNN / nn.Linear of TangShiRNN)."""
    ks = jax.random.split(key, 7)
    bound = 1.0 / float(jnp.sqrt(hidden))
    u = lambda k, shp: jax.random.uniform(k, shp, jnp.float32, -bound, bound)
    return {
        "ebd": jax.random.normal(ks[0], (vocab_size, hidden), jnp.float32),
        "w_ih": u(ks[1], (hidden, hidden)),
        "w_hh": u(ks[2], (hidden, hidden)),
        "b_ih": u(ks[3], (hidden,)),
        "b_hh": u(ks[4], (hidden,)),
        "out_w": u(ks[5], (vocab_size, hidden)),
        "out_b": u(ks[6], (vocab_size,)),
    }


if __name__ == "__main__":
    key = jax.random.PRNGKey(0)
    vocab_size, batch, seq = 256, 8, 8

    k_params, k_tokens, k_drop = jax.random.split(key, 3)
    params = init_params(k_params, vocab_size)
    inputs = jax.random.randint(k_tokens, (batch, seq), 0, vocab_size,
                                dtype=jnp.int32)
    hidden = jnp.zeros((1, batch, HIDDEN), jnp.float32)  # init_hidden() analogue

    logits, h_n = tangshi_forward(params, inputs, hidden, k_drop)
    jax.block_until_ready((logits, h_n))

    assert logits.shape == (seq, batch, vocab_size)
    assert h_n.shape == (1, batch, HIDDEN)
    assert bool(jnp.all(jnp.isfinite(logits)))
    print("KERNEL_OK")
</pallas_src>

<mosaic_0001>
module attributes {stable_mosaic.version = 11 : i64} {
  func.func @_dense_kernel(%arg0: i32, %arg1: i32, %arg2: memref<64x128xbf16, #tpu.memory_space<vmem>>, %arg3: memref<128x128xbf16, #tpu.memory_space<vmem>>, %arg4: memref<1x128xf32, #tpu.memory_space<vmem>>, %arg5: memref<64x128xf32, #tpu.memory_space<vmem>>) attributes {dimension_semantics = [#tpu.dimension_semantics<parallel>, #tpu.dimension_semantics<parallel>], iteration_bounds = array<i64: 1, 1>, scalar_prefetch = 0 : i64, scratch_operands = 0 : i64, tpu.core_type = #tpu.core_type<tc>, window_params = [{transform_indices = @transform_0, window_bounds = array<i64: 64, 128>}, {transform_indices = @transform_1, window_bounds = array<i64: 128, 128>}, {transform_indices = @transform_2, window_bounds = array<i64: 1, 128>}, {transform_indices = @transform_3, window_bounds = array<i64: 64, 128>}]} {
    %c0 = arith.constant 0 : index
    %c0_0 = arith.constant 0 : index
    %0 = vector.load %arg2[%c0, %c0_0] : memref<64x128xbf16, #tpu.memory_space<vmem>>, vector<64x128xbf16>
    %c0_1 = arith.constant 0 : index
    %c0_2 = arith.constant 0 : index
    %1 = vector.load %arg3[%c0_1, %c0_2] : memref<128x128xbf16, #tpu.memory_space<vmem>>, vector<128x128xbf16>
    %cst = arith.constant dense<0.000000e+00> : vector<64x128xf32>
    %2 = tpu.matmul %0, %1, %cst {dimension_numbers = #tpu.dot_dimension_numbers<[1], [0], [0], [1], [0, 0, 1, 1], [], []>} : vector<64x128xbf16>, vector<128x128xbf16>, vector<64x128xf32> -> vector<64x128xf32>
    %c0_3 = arith.constant 0 : index
    %c0_4 = arith.constant 0 : index
    %3 = vector.load %arg4[%c0_3, %c0_4] : memref<1x128xf32, #tpu.memory_space<vmem>>, vector<1x128xf32>
    %4 = vector.broadcast %3 : vector<1x128xf32> to vector<64x128xf32>
    %5 = arith.addf %2, %4 : vector<64x128xf32>
    %c0_5 = arith.constant 0 : index
    %c0_6 = arith.constant 0 : index
    %6 = vector.load %arg5[%c0_5, %c0_6] : memref<64x128xf32, #tpu.memory_space<vmem>>, vector<64x128xf32>
    tpu.vector_store %arg5[%c0_5, %c0_6], %5 {strides = array<i32>} : memref<64x128xf32, #tpu.memory_space<vmem>>, vector<64x128xf32>,
    return
  }
  func.func @transform_0(%arg0: i32, %arg1: i32) -> (i32, i32) {
    %c0_i32 = arith.constant 0 : i32
    %c0_i32_0 = arith.constant 0 : i32
    return %arg0, %c0_i32 : i32, i32
  }
  func.func @transform_1(%arg0: i32, %arg1: i32) -> (i32, i32) {
    %c0_i32 = arith.constant 0 : i32
    %c0_i32_0 = arith.constant 0 : i32
    return %c0_i32, %arg1 : i32, i32
  }
  func.func @transform_2(%arg0: i32, %arg1: i32) -> (i32, i32) {
    %c0_i32 = arith.constant 0 : i32
    %c0_i32_0 = arith.constant 0 : i32
    return %c0_i32, %arg1 : i32, i32
  }
  func.func @transform_3(%arg0: i32, %arg1: i32) -> (i32, i32) {
    %c0_i32 = arith.constant 0 : i32
    return %arg0, %arg1 : i32, i32
  }
}

module attributes {stable_mosaic.version = 11 : i64} {
  func.func @_rnn_kernel(%arg0: i32, %arg1: memref<8x8x128xf32, #tpu.memory_space<vmem>>, %arg2: memref<8x128xf32, #tpu.memory_space<vmem>>, %arg3: memref<128x128xf32, #tpu.memory_space<vmem>>, %arg4: memref<8x8x128xf32, #tpu.memory_space<vmem>>, %arg5: memref<8x128xf32, #tpu.memory_space<vmem>>, %arg6: memref<8x128xf32, #tpu.memory_space<vmem>>) attributes {dimension_semantics = [#tpu.dimension_semantics<arbitrary>], iteration_bounds = array<i64: 1>, scalar_prefetch = 0 : i64, scratch_operands = 1 : i64, tpu.core_type = #tpu.core_type<tc>, window_params = [{transform_indices = @transform_0, window_bounds = array<i64: 8, 8, 128>}, {pipeline_mode = #tpu.pipeline_mode<synchronous>, transform_indices = @transform_1, window_bounds = array<i64: 8, 128>}, {pipeline_mode = #tpu.pipeline_mode<synchronous>, transform_indices = @transform_2, window_bounds = array<i64: 128, 128>}, {transform_indices = @transform_3, window_bounds = array<i64: 8, 8, 128>}, {pipeline_mode = #tpu.pipeline_mode<synchronous>, transform_indices = @transform_4, window_bounds = array<i64: 8, 128>}]} {
    %c0_i32 = arith.constant 0 : i32
    %0 = arith.cmpi eq, %arg0, %c0_i32 : i32
    %1 = arith.extui %0 : i1 to i32
    %c0_i32_0 = arith.constant 0 : i32
    %2 = arith.cmpi ne, %1, %c0_i32_0 : i32
    scf.if %2 {
      %c0_62 = arith.constant 0 : index
      %c0_63 = arith.constant 0 : index
      %96 = vector.load %arg2[%c0_62, %c0_63] : memref<8x128xf32, #tpu.memory_space<vmem>>, vector<8x128xf32>
      %c0_64 = arith.constant 0 : index
      %c0_65 = arith.constant 0 : index
      %97 = vector.load %arg6[%c0_64, %c0_65] : memref<8x128xf32, #tpu.memory_space<vmem>>, vector<8x128xf32>
      tpu.vector_store %arg6[%c0_64, %c0_65], %96 {strides = array<i32>} : memref<8x128xf32, #tpu.memory_space<vmem>>, vector<8x128xf32>,
    } else {
    }
    %c0 = arith.constant 0 : index
    %c0_1 = arith.constant 0 : index
    %3 = vector.load %arg6[%c0, %c0_1] : memref<8x128xf32, #tpu.memory_space<vmem>>, vector<8x128xf32>
    %c0_i32_2 = arith.constant 0 : i32
    %4 = arith.index_cast %c0_i32_2 : i32 to index
    %c0_3 = arith.constant 0 : index
    %c0_4 = arith.constant 0 : index
    %5 = vector.load %arg1[%4, %c0_3, %c0_4] : memref<8x8x128xf32, #tpu.memory_space<vmem>>, vector<1x8x128xf32>
    %6 = vector.shape_cast %5 : vector<1x8x128xf32> to vector<8x128xf32>
    %c0_5 = arith.constant 0 : index
    %c0_6 = arith.constant 0 : index
    %7 = vector.load %arg3[%c0_5, %c0_6] : memref<128x128xf32, #tpu.memory_space<vmem>>, vector<128x128xf32>
    %cst = arith.constant dense<0.000000e+00> : vector<8x128xf32>
    %8 = tpu.matmul %3, %7, %cst {dimension_numbers = #tpu.dot_dimension_numbers<[1], [0], [0], [1], [0, 0, 1, 1], [], []>} : vector<8x128xf32>, vector<128x128xf32>, vector<8x128xf32> -> vector<8x128xf32>
    %9 = arith.addf %6, %8 : vector<8x128xf32>
    %10 = math.tanh %9 : vector<8x128xf32>
    %11 = arith.index_cast %c0_i32_2 : i32 to index
    %c0_7 = arith.constant 0 : index
    %c0_8 = arith.constant 0 : index
    %12 = vector.load %arg4[%11, %c0_7, %c0_8] : memref<8x8x128xf32, #tpu.memory_space<vmem>>, vector<1x8x128xf32>
    %13 = vector.shape_cast %12 : vector<1x8x128xf32> to vector<8x128xf32>
    %14 = vector.shape_cast %10 : vector<8x128xf32> to vector<1x8x128xf32>
    tpu.vector_store %arg4[%11, %c0_7, %c0_8], %14 {strides = array<i32>} : memref<8x8x128xf32, #tpu.memory_space<vmem>>, vector<1x8x128xf32>,
    %c1_i32 = arith.constant 1 : i32
    %15 = arith.index_cast %c1_i32 : i32 to index
    %c0_9 = arith.constant 0 : index
    %c0_10 = arith.constant 0 : index
    %16 = vector.load %arg1[%15, %c0_9, %c0_10] : memref<8x8x128xf32, #tpu.memory_space<vmem>>, vector<1x8x128xf32>
    %17 = vector.shape_cast %16 : vector<1x8x128xf32> to vector<8x128xf32>
    %c0_11 = arith.constant 0 : index
    %c0_12 = arith.constant 0 : index
    %18 = vector.load %arg3[%c0_11, %c0_12] : memref<128x128xf32, #tpu.memory_space<vmem>>, vector<128x128xf32>
    %cst_13 = arith.constant dense<0.000000e+00> : vector<8x128xf32>
    %19 = tpu.matmul %10, %18, %cst_13 {dimension_numbers = #tpu.dot_dimension_numbers<[1], [0], [0], [1], [0, 0, 1, 1], [], []>} : vector<8x128xf32>, vector<128x128xf32>, vector<8x128xf32> -> vector<8x128xf32>
    %20 = arith.addf %17, %19 : vector<8x128xf32>
    %21 = math.tanh %20 : vector<8x128xf32>
    %22 = arith.index_cast %c1_i32 : i32 to index
    %c0_14 = arith.constant 0 : index
    %c0_15 = arith.constant 0 : index
    %23 = vector.load %arg4[%22, %c0_14, %c0_15] : memref<8x8x128xf32, #tpu.memory_space<vmem>>, vector<1x8x128xf32>
    %24 = vector.shape_cast %23 : vector<1x8x128xf32> to vector<8x128xf32>
    %25 = vector.shape_cast %21 : vector<8x128xf32> to vector<1x8x128xf32>
    tpu.vector_store %arg4[%22, %c0_14, %c0_15], %25 {strides = array<i32>} : memref<8x8x128xf32, #tpu.memory_space<vmem>>, vector<1x8x128xf32>,
    %c2_i32 = arith.constant 2 : i32
    %26 = arith.index_cast %c2_i32 : i32 to index
    %c0_16 = arith.constant 0 : index
    %c0_17 = arith.constant 0 : index
    %27 = vector.load %arg1[%26, %c0_16, %c0_17] : memref<8x8x128xf32, #tpu.memory_space<vmem>>, vector<1x8x128xf32>
    %28 = vector.shape_cast %27 : vector<1x8x128xf32> to vector<8x128xf32>
    %c0_18 = arith.constant 0 : index
    %c0_19 = arith.constant 0 : index
    %29 = vector.load %arg3[%c0_18, %c0_19] : memref<128x128xf32, #tpu.memory_space<vmem>>, vector<128x128xf32>
    %cst_20 = arith.constant dense<0.000000e+00> : vector<8x128xf32>
    %30 = tpu.matmul %21, %29, %cst_20 {dimension_numbers = #tpu.dot_dimension_numbers<[1], [0], [0], [1], [0, 0, 1, 1], [], []>} : vector<8x128xf32>, vector<128x128xf32>, vector<8x128xf32> -> vector<8x128xf32>
    %31 = arith.addf %28, %30 : vector<8x128xf32>
    %32 = math.tanh %31 : vector<8x128xf32>
    %33 = arith.index_cast %c2_i32 : i32 to index
    %c0_21 = arith.constant 0 : index
    %c0_22 = arith.constant 0 : index
    %34 = vector.load %arg4[%33, %c0_21, %c0_22] : memref<8x8x128xf32, #tpu.memory_space<vmem>>, vector<1x8x128xf32>
    %35 = vector.shape_cast %34 : vector<1x8x128xf32> to vector<8x128xf32>
    %36 = vector.shape_cast %32 : vector<8x128xf32> to vector<1x8x128xf32>
    tpu.vector_store %arg4[%33, %c0_21, %c0_22], %36 {strides = array<i32>} : memref<8x8x128xf32, #tpu.memory_space<vmem>>, vector<1x8x128xf32>,
    %c3_i32 = arith.constant 3 : i32
    %37 = arith.index_cast %c3_i32 : i32 to index
    %c0_23 = arith.constant 0 : index
    %c0_24 = arith.constant 0 : index
    %38 = vector.load %arg1[%37, %c0_23, %c0_24] : memref<8x8x128xf32, #tpu.memory_space<vmem>>, vector<1x8x128xf32>
    %39 = vector.shape_cast %38 : vector<1x8x128xf32> to vector<8x128xf32>
    %c0_25 = arith.constant 0 : index
    %c0_26 = arith.constant 0 : index
    %40 = vector.load %arg3[%c0_25, %c0_26] : memref<128x128xf32, #tpu.memory_space<vmem>>, vector<128x128xf32>
    %cst_27 = arith.constant dense<0.000000e+00> : vector<8x128xf32>
    %41 = tpu.matmul %32, %40, %cst_27 {dimension_numbers = #tpu.dot_dimension_numbers<[1], [0], [0], [1], [0, 0, 1, 1], [], []>} : vector<8x128xf32>, vector<128x128xf32>, vector<8x128xf32> -> vector<8x128xf32>
    %42 = arith.addf %39, %41 : vector<8x128xf32>
    %43 = math.tanh %42 : vector<8x128xf32>
    %44 = arith.index_cast %c3_i32 : i32 to index
    %c0_28 = arith.constant 0 : index
    %c0_29 = arith.constant 0 : index
    %45 = vector.load %arg4[%44, %c0_28, %c0_29] : memref<8x8x128xf32, #tpu.memory_space<vmem>>, vector<1x8x128xf32>
    %46 = vector.shape_cast %45 : vector<1x8x128xf32> to vector<8x128xf32>
    %47 = vector.shape_cast %43 : vector<8x128xf32> to vector<1x8x128xf32>
    tpu.vector_store %arg4[%44, %c0_28, %c0_29], %47 {strides = array<i32>} : memref<8x8x128xf32, #tpu.memory_space<vmem>>, vector<1x8x128xf32>,
    %c4_i32 = arith.constant 4 : i32
    %48 = arith.index_cast %c4_i32 : i32 to index
    %c0_30 = arith.constant 0 : index
    %c0_31 = arith.constant 0 : index
    %49 = vector.load %arg1[%48, %c0_30, %c0_31] : memref<8x8x128xf32, #tpu.memory_space<vmem>>, vector<1x8x128xf32>
    %50 = vector.shape_cast %49 : vector<1x8x128xf32> to vector<8x128xf32>
    %c0_32 = arith.constant 0 : index
    %c0_33 = arith.constant 0 : index
    %51 = vector.load %arg3[%c0_32, %c0_33] : memref<128x128xf32, #tpu.memory_space<vmem>>, vector<128x128xf32>
    %cst_34 = arith.constant dense<0.000000e+00> : vector<8x128xf32>
    %52 = tpu.matmul %43, %51, %cst_34 {dimension_numbers = #tpu.dot_dimension_numbers<[1], [0], [0], [1], [0, 0, 1, 1], [], []>} : vector<8x128xf32>, vector<128x128xf32>, vector<8x128xf32> -> vector<8x128xf32>
    %53 = arith.addf %50, %52 : vector<8x128xf32>
    %54 = math.tanh %53 : vector<8x128xf32>
    %55 = arith.index_cast %c4_i32 : i32 to index
    %c0_35 = arith.constant 0 : index
    %c0_36 = arith.constant 0 : index
    %56 = vector.load %arg4[%55, %c0_35, %c0_36] : memref<8x8x128xf32, #tpu.memory_space<vmem>>, vector<1x8x128xf32>
    %57 = vector.shape_cast %56 : vector<1x8x128xf32> to vector<8x128xf32>
    %58 = vector.shape_cast %54 : vector<8x128xf32> to vector<1x8x128xf32>
    tpu.vector_store %arg4[%55, %c0_35, %c0_36], %58 {strides = array<i32>} : memref<8x8x128xf32, #tpu.memory_space<vmem>>, vector<1x8x128xf32>,
    %c5_i32 = arith.constant 5 : i32
    %59 = arith.index_cast %c5_i32 : i32 to index
    %c0_37 = arith.constant 0 : index
    %c0_38 = arith.constant 0 : index
    %60 = vector.load %arg1[%59, %c0_37, %c0_38] : memref<8x8x128xf32, #tpu.memory_space<vmem>>, vector<1x8x128xf32>
    %61 = vector.shape_cast %60 : vector<1x8x128xf32> to vector<8x128xf32>
    %c0_39 = arith.constant 0 : index
    %c0_40 = arith.constant 0 : index
    %62 = vector.load %arg3[%c0_39, %c0_40] : memref<128x128xf32, #tpu.memory_space<vmem>>, vector<128x128xf32>
    %cst_41 = arith.constant dense<0.000000e+00> : vector<8x128xf32>
    %63 = tpu.matmul %54, %62, %cst_41 {dimension_numbers = #tpu.dot_dimension_numbers<[1], [0], [0], [1], [0, 0, 1, 1], [], []>} : vector<8x128xf32>, vector<128x128xf32>, vector<8x128xf32> -> vector<8x128xf32>
    %64 = arith.addf %61, %63 : vector<8x128xf32>
    %65 = math.tanh %64 : vector<8x128xf32>
    %66 = arith.index_cast %c5_i32 : i32 to index
    %c0_42 = arith.constant 0 : index
    %c0_43 = arith.constant 0 : index
    %67 = vector.load %arg4[%66, %c0_42, %c0_43] : memref<8x8x128xf32, #tpu.memory_space<vmem>>, vector<1x8x128xf32>
    %68 = vector.shape_cast %67 : vector<1x8x128xf32> to vector<8x128xf32>
    %69 = vector.shape_cast %65 : vector<8x128xf32> to vector<1x8x128xf32>
    tpu.vector_store %arg4[%66, %c0_42, %c0_43], %69 {strides = array<i32>} : memref<8x8x128xf32, #tpu.memory_space<vmem>>, vector<1x8x128xf32>,
    %c6_i32 = arith.constant 6 : i32
    %70 = arith.index_cast %c6_i32 : i32 to index
    %c0_44 = arith.constant 0 : index
    %c0_45 = arith.constant 0 : index
    %71 = vector.load %arg1[%70, %c0_44, %c0_45] : memref<8x8x128xf32, #tpu.memory_space<vmem>>, vector<1x8x128xf32>
    %72 = vector.shape_cast %71 : vector<1x8x128xf32> to vector<8x128xf32>
    %c0_46 = arith.constant 0 : index
    %c0_47 = arith.constant 0 : index
    %73 = vector.load %arg3[%c0_46, %c0_47] : memref<128x128xf32, #tpu.memory_space<vmem>>, vector<128x128xf32>
    %cst_48 = arith.constant dense<0.000000e+00> : vector<8x128xf32>
    %74 = tpu.matmul %65, %73, %cst_48 {dimension_numbers = #tpu.dot_dimension_numbers<[1], [0], [0], [1], [0, 0, 1, 1], [], []>} : vector<8x128xf32>, vector<128x128xf32>, vector<8x128xf32> -> vector<8x128xf32>
    %75 = arith.addf %72, %74 : vector<8x128xf32>
    %76 = math.tanh %75 : vector<8x128xf32>
    %77 = arith.index_cast %c6_i32 : i32 to index
    %c0_49 = arith.constant 0 : index
    %c0_50 = arith.constant 0 : index
    %78 = vector.load %arg4[%77, %c0_49, %c0_50] : memref<8x8x128xf32, #tpu.memory_space<vmem>>, vector<1x8x128xf32>
    %79 = vector.shape_cast %78 : vector<1x8x128xf32> to vector<8x128xf32>
    %80 = vector.shape_cast %76 : vector<8x128xf32> to vector<1x8x128xf32>
    tpu.vector_store %arg4[%77, %c0_49, %c0_50], %80 {strides = array<i32>} : memref<8x8x128xf32, #tpu.memory_space<vmem>>, vector<1x8x128xf32>,
    %c7_i32 = arith.constant 7 : i32
    %81 = arith.index_cast %c7_i32 : i32 to index
    %c0_51 = arith.constant 0 : index
    %c0_52 = arith.constant 0 : index
    %82 = vector.load %arg1[%81, %c0_51, %c0_52] : memref<8x8x128xf32, #tpu.memory_space<vmem>>, vector<1x8x128xf32>
    %83 = vector.shape_cast %82 : vector<1x8x128xf32> to vector<8x128xf32>
    %c0_53 = arith.constant 0 : index
    %c0_54 = arith.constant 0 : index
    %84 = vector.load %arg3[%c0_53, %c0_54] : memref<128x128xf32, #tpu.memory_space<vmem>>, vector<128x128xf32>
    %cst_55 = arith.constant dense<0.000000e+00> : vector<8x128xf32>
    %85 = tpu.matmul %76, %84, %cst_55 {dimension_numbers = #tpu.dot_dimension_numbers<[1], [0], [0], [1], [0, 0, 1, 1], [], []>} : vector<8x128xf32>, vector<128x128xf32>, vector<8x128xf32> -> vector<8x128xf32>
    %86 = arith.addf %83, %85 : vector<8x128xf32>
    %87 = math.tanh %86 : vector<8x128xf32>
    %88 = arith.index_cast %c7_i32 : i32 to index
    %c0_56 = arith.constant 0 : index
    %c0_57 = arith.constant 0 : index
    %89 = vector.load %arg4[%88, %c0_56, %c0_57] : memref<8x8x128xf32, #tpu.memory_space<vmem>>, vector<1x8x128xf32>
    %90 = vector.shape_cast %89 : vector<1x8x128xf32> to vector<8x128xf32>
    %91 = vector.shape_cast %87 : vector<8x128xf32> to vector<1x8x128xf32>
    tpu.vector_store %arg4[%88, %c0_56, %c0_57], %91 {strides = array<i32>} : memref<8x8x128xf32, #tpu.memory_space<vmem>>, vector<1x8x128xf32>,
    %c8_i32 = arith.constant 8 : i32
    %c0_58 = arith.constant 0 : index
    %c0_59 = arith.constant 0 : index
    %92 = vector.load %arg6[%c0_58, %c0_59] : memref<8x128xf32, #tpu.memory_space<vmem>>, vector<8x128xf32>
    tpu.vector_store %arg6[%c0_58, %c0_59], %87 {strides = array<i32>} : memref<8x128xf32, #tpu.memory_space<vmem>>, vector<8x128xf32>,
    %c0_i32_60 = arith.constant 0 : i32
    %93 = arith.cmpi eq, %arg0, %c0_i32_60 : i32
    %94 = arith.extui %93 : i1 to i32
    %c0_i32_61 = arith.constant 0 : i32
    %95 = arith.cmpi ne, %94, %c0_i32_61 : i32
    scf.if %95 {
      %c0_62 = arith.constant 0 : index
      %c0_63 = arith.constant 0 : index
      %96 = vector.load %arg5[%c0_62, %c0_63] : memref<8x128xf32, #tpu.memory_space<vmem>>, vector<8x128xf32>
      tpu.vector_store %arg5[%c0_62, %c0_63], %87 {strides = array<i32>} : memref<8x128xf32, #tpu.memory_space<vmem>>, vector<8x128xf32>,
    } else {
    }
    return
  }
  func.func @transform_0(%arg0: i32) -> (i32, i32, i32) {
    %c0_i32 = arith.constant 0 : i32
    %c0_i32_0 = arith.constant 0 : i32
    %c0_i32_1 = arith.constant 0 : i32
    return %arg0, %c0_i32, %c0_i32_0 : i32, i32, i32
  }
  func.func @transform_1(%arg0: i32) -> (i32, i32) {
    %c0_i32 = arith.constant 0 : i32
    %c0_i32_0 = arith.constant 0 : i32
    %c0_i32_1 = arith.constant 0 : i32
    return %c0_i32, %c0_i32_0 : i32, i32
  }
  func.func @transform_2(%arg0: i32) -> (i32, i32) {
    %c0_i32 = arith.constant 0 : i32
    %c0_i32_0 = arith.constant 0 : i32
    %c0_i32_1 = arith.constant 0 : i32
    return %c0_i32, %c0_i32_0 : i32, i32
  }
  func.func @transform_3(%arg0: i32) -> (i32, i32, i32) {
    %c0_i32 = arith.constant 0 : i32
    %c0_i32_0 = arith.constant 0 : i32
    %c0_i32_1 = arith.constant 0 : i32
    return %arg0, %c0_i32, %c0_i32_0 : i32, i32, i32
  }
  func.func @transform_4(%arg0: i32) -> (i32, i32) {
    %c0_i32 = arith.constant 0 : i32
    %c0_i32_0 = arith.constant 0 : i32
    %c0_i32_1 = arith.constant 0 : i32
    return %c0_i32, %c0_i32_0 : i32, i32
  }
}

module attributes {stable_mosaic.version = 11 : i64} {
  func.func @_dense_kernel(%arg0: i32, %arg1: i32, %arg2: memref<64x128xbf16, #tpu.memory_space<vmem>>, %arg3: memref<128x128xbf16, #tpu.memory_space<vmem>>, %arg4: memref<1x128xf32, #tpu.memory_space<vmem>>, %arg5: memref<64x128xf32, #tpu.memory_space<vmem>>) attributes {dimension_semantics = [#tpu.dimension_semantics<parallel>, #tpu.dimension_semantics<parallel>], iteration_bounds = array<i64: 1, 2>, scalar_prefetch = 0 : i64, scratch_operands = 0 : i64, tpu.core_type = #tpu.core_type<tc>, window_params = [{transform_indices = @transform_0, window_bounds = array<i64: 64, 128>}, {transform_indices = @transform_1, window_bounds = array<i64: 128, 128>}, {transform_indices = @transform_2, window_bounds = array<i64: 1, 128>}, {transform_indices = @transform_3, window_bounds = array<i64: 64, 128>}]} {
    %c0 = arith.constant 0 : index
    %c0_0 = arith.constant 0 : index
    %0 = vector.load %arg2[%c0, %c0_0] : memref<64x128xbf16, #tpu.memory_space<vmem>>, vector<64x128xbf16>
    %c0_1 = arith.constant 0 : index
    %c0_2 = arith.constant 0 : index
    %1 = vector.load %arg3[%c0_1, %c0_2] : memref<128x128xbf16, #tpu.memory_space<vmem>>, vector<128x128xbf16>
    %cst = arith.constant dense<0.000000e+00> : vector<64x128xf32>
    %2 = tpu.matmul %0, %1, %cst {dimension_numbers = #tpu.dot_dimension_numbers<[1], [0], [0], [1], [0, 0, 1, 1], [], []>} : vector<64x128xbf16>, vector<128x128xbf16>, vector<64x128xf32> -> vector<64x128xf32>
    %c0_3 = arith.constant 0 : index
    %c0_4 = arith.constant 0 : index
    %3 = vector.load %arg4[%c0_3, %c0_4] : memref<1x128xf32, #tpu.memory_space<vmem>>, vector<1x128xf32>
    %4 = vector.broadcast %3 : vector<1x128xf32> to vector<64x128xf32>
    %5 = arith.addf %2, %4 : vector<64x128xf32>
    %c0_5 = arith.constant 0 : index
    %c0_6 = arith.constant 0 : index
    %6 = vector.load %arg5[%c0_5, %c0_6] : memref<64x128xf32, #tpu.memory_space<vmem>>, vector<64x128xf32>
    tpu.vector_store %arg5[%c0_5, %c0_6], %5 {strides = array<i32>} : memref<64x128xf32, #tpu.memory_space<vmem>>, vector<64x128xf32>,
    return
  }
  func.func @transform_0(%arg0: i32, %arg1: i32) -> (i32, i32) {
    %c0_i32 = arith.constant 0 : i32
    %c0_i32_0 = arith.constant 0 : i32
    return %arg0, %c0_i32 : i32, i32
  }
  func.func @transform_1(%arg0: i32, %arg1: i32) -> (i32, i32) {
    %c0_i32 = arith.constant 0 : i32
    %c0_i32_0 = arith.constant 0 : i32
    return %c0_i32, %arg1 : i32, i32
  }
  func.func @transform_2(%arg0: i32, %arg1: i32) -> (i32, i32) {
    %c0_i32 = arith.constant 0 : i32
    %c0_i32_0 = arith.constant 0 : i32
    return %c0_i32, %arg1 : i32, i32
  }
  func.func @transform_3(%arg0: i32, %arg1: i32) -> (i32, i32) {
    %c0_i32 = arith.constant 0 : i32
    return %arg0, %arg1 : i32, i32
  }
}

</mosaic_0001>

<bundles_post_ra>
// kernel: tangshi_forward.5
= control target key start
LH: loop header
LB: loop body
LE: loop exit
PB: predicated region body
PF: predicated region fallthrough
CT: control target
= control target key end

     0   :  { %8 = vsyncpa [#allocation4], 0  ;;  %s1003_s0 = inlined_call_operand.vmem [shape: bf16[64,128], index: 0, kind: input, shape index: {}]   ;;  %s1004_s1 = inlined_call_operand.vmem [shape: bf16[128,256], index: 1, kind: input, shape index: {}]   ;;  %s1005_s2 = inlined_call_operand.vmem [shape: f32[1,256], index: 2, kind: input, shape index: {}]   ;;  %s1006_s3 = inlined_call_operand.hbm [shape: f32[64,256], index: 3, kind: output, shape index: {}]  }
   0x1   :  { %10 = vsyncpa [#allocation4 + $0x1], 0  ;;  %s840_s12 = smov 0   ;;  %s842_s13 = smov 0  }
   0x2   :  { %s844_s14 = smov 0   ;;  %s846_s15 = smov 0  }
   0x3   :  { %s848_s16 = smov 0   ;;  %s850_s17 = smov 0  }
   0x4 LB: > { %s580_s18 = sadd.s32 4294967295, %s815_s17   ;;  %s581_s19 = sadd.s32 4294967294, %s815_s17   ;;  %s815_s17 = sphi %s850_s17, %s16_s17   ;;  %s811_s16 = sphi %s848_s16, %s1013_s16   ;;  %s807_s15 = sphi %s846_s15, %s1012_s15   ;;  %s803_s14 = sphi %s844_s14, %s1011_s14   ;;  %s799_s13 = sphi %s842_s13, %s1010_s13   ;;  %s795_s12 = sphi %s840_s12, %s1009_s12  }
   0x5   : > { %s25_s20 = sadd.s32 1, %s811_s16  ;;  %s61_s21 = sadd.s32 1, %s803_s14 }
   0x6   : > { %p26_p0 = scmp.ge.s32.totalorder %s25_s20, 2  ;;  %p68_p1 = scmp.ne.s32.totalorder %s803_s14, %s799_s13 }
   0x7   : > { %p69_p2 = scmp.eq.s32.totalorder %s815_s17, 0  ;;  %p126_p3 = scmp.eq.s32.totalorder %s580_s18, 1 }
   0x8   : > { %s1015_s20 = smov (%p26_p0, %s25_s20), 0  ;;  %p131_p6 = scmp.ne.s32.totalorder %s799_s13, %s795_s12 }
   0x9   : > { %p70_p4 = por %p69_p2, %p68_p1  ;;  %p879_p5 = por %p126_p3, %p68_p1 }
   0xa   : > { %s58_s23 = ssub.s32 %s811_s16, %s1015_s20  ;;  %p132_p8 = scmp.eq.s32.totalorder %s581_s19, 1 }
   0xb   : > { %p59_p7 = scmp.eq.s32.totalorder %s58_s23, 0  ;;  %p584_p10 = scmp.ge.s32.totalorder %s815_s17, 2 }
   0xc   : > { %p890_p9 = por %p132_p8, %p131_p6 }
   0xd   : > { %s888_s24 = scalar_select %p59_p7, %s803_s14, %s61_s21  }
   0xe   : > { %157 = sbr.rel (%p584_p10) target bundleno = 39 (0x27), region = 20 }
  0x13   : > { %160 = sbr.rel (!%p70_p4) target bundleno = 39 (0x27), region = 24  ;;  %s162_s26 = sand.u32 (%p70_p4), 1, %s803_s14  }
  0x14   : > { %s586_s27 = sshll.u32 (%p70_p4), %s811_s16, 2  ;;  %s585_s28 = sshll.u32 (%p70_p4), %s162_s26, 6 }
  0x15   : > { %s902_s4 = scalar_lea.vmem (%p70_p4), %s1004_s1, %s586_s27  ;;  %s164_s5 = scalar_lea.vmem (%p70_p4), [#allocation2], %s585_s28 }
  0x16   : > { %v183_v0 = vld [vmem:[%s902_s4] sm:$0xf] (%p70_p4)  ;;  %v185_v1 = vld [vmem:[%s902_s4 + $0x8] sm:$0xf] (%p70_p4)  ;;  %v187_v2 = vld [vmem:[%s902_s4 + $0x10] sm:$0xf] (%p70_p4) }
  0x17   : > { %184 = vst [vmem:[%s164_s5] sm:$0xf] (%p70_p4), %v183_v0  ;;  %v189_v3 = vld [vmem:[%s902_s4 + $0x18] sm:$0xf] (%p70_p4)  ;;  %v191_v4 = vld [vmem:[%s902_s4 + $0x20] sm:$0xf] (%p70_p4) }
  0x18   : > { %186 = vst [vmem:[%s164_s5 + $0x4] sm:$0xf] %v185_v1  ;;  %v193_v5 = vld [vmem:[%s902_s4 + $0x28] sm:$0xf]  ;;  %v195_v6 = vld [vmem:[%s902_s4 + $0x30] sm:$0xf] }
  0x19   : > { %188 = vst [vmem:[%s164_s5 + $0x8] sm:$0xf] %v187_v2  ;;  %v197_v7 = vld [vmem:[%s902_s4 + $0x38] sm:$0xf]  ;;  %v199_v8 = vld [vmem:[%s902_s4 + $0x40] sm:$0xf] }
  0x1a   : > { %190 = vst [vmem:[%s164_s5 + $0xc] sm:$0xf] %v189_v3  ;;  %v201_v9 = vld [vmem:[%s902_s4 + $0x48] sm:$0xf]  ;;  %v203_v10 = vld [vmem:[%s902_s4 + $0x50] sm:$0xf] }
  0x1b   : > { %192 = vst [vmem:[%s164_s5 + $0x10] sm:$0xf] %v191_v4  ;;  %v205_v11 = vld [vmem:[%s902_s4 + $0x58] sm:$0xf]  ;;  %v207_v12 = vld [vmem:[%s902_s4 + $0x60] sm:$0xf] }
  0x1c   : > { %194 = vst [vmem:[%s164_s5 + $0x14] sm:$0xf] %v193_v5  ;;  %v209_v13 = vld [vmem:[%s902_s4 + $0x68] sm:$0xf]  ;;  %v211_v14 = vld [vmem:[%s902_s4 + $0x70] sm:$0xf] }
  0x1d   : > { %196 = vst [vmem:[%s164_s5 + $0x18] sm:$0xf] %v195_v6  ;;  %v213_v15 = vld [vmem:[%s902_s4 + $0x78] sm:$0xf] }
  0x1e   : > { %198 = vst [vmem:[%s164_s5 + $0x1c] sm:$0xf] %v197_v7 }
  0x1f   : > { %200 = vst [vmem:[%s164_s5 + $0x20] sm:$0xf] %v199_v8 }
  0x20   : > { %202 = vst [vmem:[%s164_s5 + $0x24] sm:$0xf] %v201_v9 }
  0x21   : > { %204 = vst [vmem:[%s164_s5 + $0x28] sm:$0xf] %v203_v10 }
  0x22   : > { %206 = vst [vmem:[%s164_s5 + $0x2c] sm:$0xf] %v205_v11 }
  0x23   : > { %208 = vst [vmem:[%s164_s5 + $0x30] sm:$0xf] %v207_v12 }
  0x24   : > { %210 = vst [vmem:[%s164_s5 + $0x34] sm:$0xf] %v209_v13 }
  0x25   : > { %212 = vst [vmem:[%s164_s5 + $0x38] sm:$0xf] %v211_v14 }
  0x26   : > { %214 = vst [vmem:[%s164_s5 + $0x3c] sm:$0xf] %v213_v15 }
  0x27 PF: > { %p587_p11 = scmp.ge.s32.totalorder %s815_s17, 1  ;;  %p275_p12 = scmp.lt.s32.totalorder %s815_s17, 3 }
  0x29   : > { %p276_p13 = pnand %p587_p11, %p275_p12 }
  0x2a   : > { %s282_s6 = sand.u32 (!%p276_p13), 1, %s799_s13   ;;  %p319_p0 = scmp.lt.s32.totalorder (!%p276_p13), %s807_s15, 1 }
  0x2b   : > { %279 = sbr.rel (%p276_p13) target bundleno = 229 (0xe5), region = 69  ;;  %s926_s7 = sshll.u32 (!%p276_p13), %s282_s6, 6 }
  0x2c   : > { %s929_s8 = scalar_lea.vmem (!%p276_p13), [#allocation2], %s926_s7  ;;  %s639_s10 = sshll.u32 (!%p276_p13), %s807_s15, 3 }
  0x2d   : > { %s757_s28 = scalar_lea.hbm (!%p276_p13), %s1006_s3, 128 }
  0x30   : > { %v653_v16 = vld [vmem:[%s929_s8 + $0x38] sm:$0xff]  ;;  %s933_s9 = scalar_select %p319_p0, %s807_s15, 1  ;;  %v652_v17 = vld [vmem:[%s929_s8 + $0x30] sm:$0xff]  ;;  %v651_v18 = vld [vmem:[%s929_s8 + $0x28] sm:$0xff] }
  0x31   : > { %423 = vmatpush.bf16.msra.mxu0 %v653_v16  ;;  %654 = vmatpush.bf16.msra.mxu1 %v653_v16  ;;  %v650_v19 = vld [vmem:[%s929_s8 + $0x20] sm:$0xff]  ;;  %v649_v20 = vld [vmem:[%s929_s8 + $0x18] sm:$0xff]  ;;  %v648_v21 = vld [vmem:[%s929_s8 + $0x10] sm:$0xff]  ;;  %s461_s15 = scalar_lea.sflag [#allocation4], %s282_s6 }
  0x32   : > { %s321_s18 = scalar_lea.vmem %s1005_s2, %s933_s9  ;;  %655 = vmatpush.bf16.msra.mxu2 %v653_v16  ;;  %656 = vmatpush.bf16.msra.mxu3 %v653_v16  ;;  %v647_v22 = vld [vmem:[%s929_s8 + $0x8] sm:$0xff]  ;;  %v646_v23 = vld [vmem:[%s929_s8] sm:$0xff]  ;;  %v644_v26 = vld [vmem:[%s1003_s0 + $0x10] sm:$0xff]  ;;  %s312_s8 = scalar_lea.vmem [#allocation3], %s926_s7 }
  0x33   : > { %v642_v24 = vld [vmem:[%s1003_s0] sm:$0xff]  ;;  %v643_v25 = vld [vmem:[%s1003_s0 + $0x8] sm:$0xff]  ;;  %v645_v27 = vld [vmem:[%s1003_s0 + $0x18] sm:$0xff]  ;;  %s475_s19 = sshll.u32 %s312_s8, 4  ;;  %s476_s19 = int_to_ptr.vmem [resolvable:$true] %s475_s19 }
  0x34   : > { %v736_v28 = vld [vmem:[%s321_s18] ss:$0 sm:$0xff]  ;;  %s474_s18 = scalar_lea.hbm %s1006_s3, %s639_s10 }
  0x35   : > { %424 = vmatpush.bf16.msra.mxu0 %v652_v17  ;;  %657 = vmatpush.bf16.msra.mxu1 %v652_v17  ;;  %s477_s7 = sshll.u32 %s474_s18, 4  ;;  %s478_s7 = int_to_ptr.hbm [resolvable:$true] %s477_s7 }
  0x36   : > { %658 = vmatpush.bf16.msra.mxu2 %v652_v17  ;;  %659 = vmatpush.bf16.msra.mxu3 %v652_v17  ;;  %s751_s21 = sshra.s32 %s478_s7, 4  ;;  %s752_s21 = int_to_ptr.hbm [resolvable:$true] %s751_s21 }
  0x37   : > { %s753_s23 = scalar_lea.hbm %s752_s21, 64  ;;  %p758_p4 = scmp.lt.s32.totalorder %s752_s21, %s1006_s3 }
  0x38   : > { %p754_p1 = scmp.ne.s32.totalorder %s752_s21, %s753_s23  ;;  %p759_p6 = scmp.lt.s32.totalorder %s757_s28, %s753_s23 }
  0x39   : > { %425 = vmatpush.bf16.msra.mxu0 %v651_v18  ;;  %660 = vmatpush.bf16.msra.mxu1 %v651_v18 }
  0x3a   : > { %661 = vmatpush.bf16.msra.mxu2 %v651_v18  ;;  %662 = vmatpush.bf16.msra.mxu3 %v651_v18  ;;  %p755_p2 = pnand %p754_p1, %p879_p5  ;;  %p760_p7 = por %p759_p6, %p758_p4 }
  0x3c   : > { %p756_p3 = pneg %p755_p2 }
  0x3d   : > { %426 = vmatpush.bf16.msra.mxu0 %v650_v19  ;;  %663 = vmatpush.bf16.msra.mxu1 %v650_v19 }
  0x3e   : > { %664 = vmatpush.bf16.msra.mxu2 %v650_v19  ;;  %665 = vmatpush.bf16.msra.mxu3 %v650_v19  ;;  %p761_p8 = pnand %p760_p7, %p756_p3 }
  0x41   : > { %427 = vmatpush.bf16.msra.mxu0 %v649_v20  ;;  %666 = vmatpush.bf16.msra.mxu1 %v649_v20 }
  0x42   : > { %667 = vmatpush.bf16.msra.mxu2 %v649_v20  ;;  %668 = vmatpush.bf16.msra.mxu3 %v649_v20 }
  0x45   : > { %428 = vmatpush.bf16.msra.mxu0 %v648_v21  ;;  %669 = vmatpush.bf16.msra.mxu1 %v648_v21 }
  0x46   : > { %670 = vmatpush.bf16.msra.mxu2 %v648_v21  ;;  %671 = vmatpush.bf16.msra.mxu3 %v648_v21 }
  0x49   : > { %429 = vmatpush.bf16.msra.mxu0 %v647_v22  ;;  %672 = vmatpush.bf16.msra.mxu1 %v647_v22 }
  0x4a   : > { %673 = vmatpush.bf16.msra.mxu2 %v647_v22  ;;  %674 = vmatpush.bf16.msra.mxu3 %v647_v22 }
  0x4d   : > { %430 = vmatpush.bf16.msra.mxu0 %v646_v23  ;;  %675 = vmatpush.bf16.msra.mxu1 %v646_v23 }
  0x4e   : > { %676 = vmatpush.bf16.msra.mxu2 %v646_v23  ;;  %677 = vmatpush.bf16.msra.mxu3 %v646_v23 }
  0x50   : > { %431 = vmatmul.bf16.vlgmr.msra.gmra.mxu0 %v642_v24  ;;  %436 = vmatmul.bf16.vlgmr.msra.gmra.mxu1 %v643_v25 }
  0x51   : > { %441 = vmatmul.bf16.vlgmr.msra.gmra.mxu2 %v644_v26  ;;  %446 = vmatmul.bf16.vlgmr.msra.gmra.mxu3 %v645_v27 }
  0xcd   : > { %v432_v29 = vpop.f32.mrf.mxu0  ;;  %v437_v30 = vpop.f32.mrf.mxu1 }
  0xce   : > { %v433_v31 = vadd.f32 %v736_v28, %v432_v29  ;;  %v438_v32 = vadd.f32 %v736_v28, %v437_v30 }
  0xd0   : > { %452 = vst [vmem:[%s312_s8] sm:$0xff] %v433_v31 }
  0xd1   : > { %454 = vst [vmem:[%s312_s8 + $0x10] sm:$0xff] %v438_v32 }
  0xd4   : > { %v442_v33 = vpop.f32.mrf.mxu2  ;;  %v447_v34 = vpop.f32.mrf.mxu3 }
  0xd5   : > { %v443_v35 = vadd.f32 %v736_v28, %v442_v33  ;;  %v448_v36 = vadd.f32 %v736_v28, %v447_v34  ;;  %v434_v37 = vpop.f32.mrf.mxu0  ;;  %v439_v38 = vpop.f32.mrf.mxu1 }
  0xd6   : > { %v435_v39 = vadd.f32 %v736_v28, %v434_v37  ;;  %v440_v40 = vadd.f32 %v736_v28, %v439_v38 }
  0xd7   : > { %456 = vst [vmem:[%s312_s8 + $0x20] sm:$0xff] %v443_v35 }
  0xd8   : > { %458 = vst [vmem:[%s312_s8 + $0x30] sm:$0xff] %v448_v36 }
  0xd9   : > { %453 = vst [vmem:[%s312_s8 + $0x8] sm:$0xff] %v435_v39 }
  0xda   : > { %455 = vst [vmem:[%s312_s8 + $0x18] sm:$0xff] %v440_v40 }
  0xdc   : > { %v444_v41 = vpop.f32.mrf.mxu2  ;;  %v449_v42 = vpop.f32.mrf.mxu3 }
  0xdd   : > { %v445_v43 = vadd.f32 %v736_v28, %v444_v41  ;;  %v450_v44 = vadd.f32 %v736_v28, %v449_v42 }
  0xdf   : > { %457 = vst [vmem:[%s312_s8 + $0x28] sm:$0xff] %v445_v43 }
  0xe0   : > { %459 = vst [vmem:[%s312_s8 + $0x38] sm:$0xff] %v450_v44 }
  0xe1   : > { %764 = shalt.err (!%p761_p8)
}
  0xe2   : > { %s817_s6 = smov 128   ;;  %s818_s4 = smov 256  }
  0xe3   : > { %s819_s5 = smov 8  }
  0xe4   : > { %678 = dma.vmem_to_hbm [thread:$0]  (%p879_p5), %s476_s19, 1024, %s478_s7, %s461_s15, %s817_s6, %s818_s4, %s819_s5  }
  0xe5 PF: > { %s492_s8 = sand.u32 1, %s795_s12   ;;  %p681_p11 = pnand %p584_p10, %p890_p9 }
  0xe6   : > { %s493_s10 = scalar_lea.sflag [#allocation4], %s492_s8 }
  0xe7   : > { %p682_p12 = pneg %p681_p11 }
  0xe9   : > { %790 = dma.done.wait (%p682_p12), %s493_s10, 1024  }
  0xea   : > { %792 = vsyncadd (%p682_p12), %s493_s10, 4294966272  ;;  %s16_s17 = sadd.s32 1, %s815_s17   ;;  %s1009_s12 = smov %s799_s13 }
  0xeb   : > { %p13_p13 = scmp.ge.s32.totalorder %s16_s17, 4   ;;  %s1010_s13 = smov %s803_s14 }
  0xec   : > { %s1011_s14 = smov %s888_s24  ;;  %s1012_s15 = smov %s811_s16 }
  0xed   : > { %s1013_s16 = smov %s1015_s20  ;;  %15 = sbr.rel (!%p13_p13) target bundleno = 4 (0x4), region = 119 }
  0xf2   :  { %499 = vsyncpa [#allocation4], 1 }
  0xf3   :  { %501 = vsyncpa [#allocation4 + $0x1], 1 }

// kernel: tangshi_forward.3
= control target key start
LH: loop header
LB: loop body
LE: loop exit
PB: predicated region body
PF: predicated region fallthrough
CT: control target
= control target key end

     0   :  { %s323_s1 = inlined_call_operand.vmem [shape: bf16[128,128], index: 1, kind: input, shape index: {}]   ;;  %s324_s2 = inlined_call_operand.vmem [shape: f32[1,128], index: 2, kind: input, shape index: {}]   ;;  %s325_s0 = inlined_call_operand.vmem [shape: bf16[64,128], index: 0, kind: input, shape index: {}]   ;;  %s326_s3 = inlined_call_operand.vmem [shape: f32[64,128], index: 3, kind: output, shape index: {}]  }
   0x1   :  { %v214_v0 = vld [vmem:[%s323_s1 + $0x38] sm:$0xff]  ;;  %v213_v1 = vld [vmem:[%s323_s1 + $0x30] sm:$0xff]  ;;  %v212_v2 = vld [vmem:[%s323_s1 + $0x28] sm:$0xff] }
   0x2   :  { %114 = vmatpush.bf16.msra.mxu0 %v214_v0  ;;  %215 = vmatpush.bf16.msra.mxu1 %v214_v0  ;;  %v211_v3 = vld [vmem:[%s323_s1 + $0x20] sm:$0xff]  ;;  %v210_v4 = vld [vmem:[%s323_s1 + $0x18] sm:$0xff]  ;;  %v209_v5 = vld [vmem:[%s323_s1 + $0x10] sm:$0xff] }
   0x3   :  { %216 = vmatpush.bf16.msra.mxu2 %v214_v0  ;;  %217 = vmatpush.bf16.msra.mxu3 %v214_v0  ;;  %v208_v6 = vld [vmem:[%s323_s1 + $0x8] sm:$0xff]  ;;  %v207_v7 = vld [vmem:[%s323_s1] sm:$0xff]  ;;  %v205_v10 = vld [vmem:[%s325_s0 + $0x10] sm:$0xff] }
   0x4   :  { %v203_v8 = vld [vmem:[%s325_s0] sm:$0xff]  ;;  %v204_v9 = vld [vmem:[%s325_s0 + $0x8] sm:$0xff]  ;;  %v206_v11 = vld [vmem:[%s325_s0 + $0x18] sm:$0xff] }
   0x5   :  { %v239_v12 = vld [vmem:[%s324_s2] ss:$0 sm:$0xff] }
   0x6   :  { %115 = vmatpush.bf16.msra.mxu0 %v213_v1  ;;  %218 = vmatpush.bf16.msra.mxu1 %v213_v1 }
   0x7   :  { %219 = vmatpush.bf16.msra.mxu2 %v213_v1  ;;  %220 = vmatpush.bf16.msra.mxu3 %v213_v1 }
   0xa   :  { %116 = vmatpush.bf16.msra.mxu0 %v212_v2  ;;  %221 = vmatpush.bf16.msra.mxu1 %v212_v2 }
   0xb   :  { %222 = vmatpush.bf16.msra.mxu2 %v212_v2  ;;  %223 = vmatpush.bf16.msra.mxu3 %v212_v2 }
   0xe   :  { %117 = vmatpush.bf16.msra.mxu0 %v211_v3  ;;  %224 = vmatpush.bf16.msra.mxu1 %v211_v3 }
   0xf   :  { %225 = vmatpush.bf16.msra.mxu2 %v211_v3  ;;  %226 = vmatpush.bf16.msra.mxu3 %v211_v3 }
  0x12   :  { %118 = vmatpush.bf16.msra.mxu0 %v210_v4  ;;  %227 = vmatpush.bf16.msra.mxu1 %v210_v4 }
  0x13   :  { %228 = vmatpush.bf16.msra.mxu2 %v210_v4  ;;  %229 = vmatpush.bf16.msra.mxu3 %v210_v4 }
  0x16   :  { %119 = vmatpush.bf16.msra.mxu0 %v209_v5  ;;  %230 = vmatpush.bf16.msra.mxu1 %v209_v5 }
  0x17   :  { %231 = vmatpush.bf16.msra.mxu2 %v209_v5  ;;  %232 = vmatpush.bf16.msra.mxu3 %v209_v5 }
  0x1a   :  { %120 = vmatpush.bf16.msra.mxu0 %v208_v6  ;;  %233 = vmatpush.bf16.msra.mxu1 %v208_v6 }
  0x1b   :  { %234 = vmatpush.bf16.msra.mxu2 %v208_v6  ;;  %235 = vmatpush.bf16.msra.mxu3 %v208_v6 }
  0x1e   :  { %121 = vmatpush.bf16.msra.mxu0 %v207_v7  ;;  %236 = vmatpush.bf16.msra.mxu1 %v207_v7 }
  0x1f   :  { %237 = vmatpush.bf16.msra.mxu2 %v207_v7  ;;  %238 = vmatpush.bf16.msra.mxu3 %v207_v7 }
  0x21   :  { %122 = vmatmul.bf16.vlgmr.msra.gmra.mxu0 %v203_v8  ;;  %127 = vmatmul.bf16.vlgmr.msra.gmra.mxu1 %v204_v9 }
  0x22   :  { %132 = vmatmul.bf16.vlgmr.msra.gmra.mxu2 %v205_v10  ;;  %137 = vmatmul.bf16.vlgmr.msra.gmra.mxu3 %v206_v11 }
  0x9e   :  { %v123_v13 = vpop.f32.mrf.mxu0  ;;  %v128_v14 = vpop.f32.mrf.mxu1 }
  0x9f   :  { %v124_v15 = vadd.f32 %v239_v12, %v123_v13  ;;  %v129_v16 = vadd.f32 %v239_v12, %v128_v14 }
  0xa1   :  { %143 = vst [vmem:[%s326_s3] sm:$0xff] %v124_v15 }
  0xa2   :  { %145 = vst [vmem:[%s326_s3 + $0x10] sm:$0xff] %v129_v16 }
  0xa5   :  { %v133_v17 = vpop.f32.mrf.mxu2  ;;  %v138_v18 = vpop.f32.mrf.mxu3 }
  0xa6   :  { %v134_v19 = vadd.f32 %v239_v12, %v133_v17  ;;  %v139_v20 = vadd.f32 %v239_v12, %v138_v18  ;;  %v125_v21 = vpop.f32.mrf.mxu0  ;;  %v130_v22 = vpop.f32.mrf.mxu1 }
  0xa7   :  { %v126_v23 = vadd.f32 %v239_v12, %v125_v21  ;;  %v131_v24 = vadd.f32 %v239_v12, %v130_v22 }
  0xa8   :  { %147 = vst [vmem:[%s326_s3 + $0x20] sm:$0xff] %v134_v19 }
  0xa9   :  { %149 = vst [vmem:[%s326_s3 + $0x30] sm:$0xff] %v139_v20 }
  0xaa   :  { %144 = vst [vmem:[%s326_s3 + $0x8] sm:$0xff] %v126_v23 }
  0xab   :  { %146 = vst [vmem:[%s326_s3 + $0x18] sm:$0xff] %v131_v24 }
  0xad   :  { %v135_v25 = vpop.f32.mrf.mxu2  ;;  %v140_v26 = vpop.f32.mrf.mxu3 }
  0xae   :  { %v136_v27 = vadd.f32 %v239_v12, %v135_v25  ;;  %v141_v28 = vadd.f32 %v239_v12, %v140_v26 }
  0xb0   :  { %148 = vst [vmem:[%s326_s3 + $0x28] sm:$0xff] %v136_v27 }
  0xb1   :  { %150 = vst [vmem:[%s326_s3 + $0x38] sm:$0xff] %v141_v28 }

// kernel: tangshi_forward.4
= control target key start
LH: loop header
LB: loop body
LE: loop exit
PB: predicated region body
PF: predicated region fallthrough
CT: control target
= control target key end

     0   :  { %s728_s0 = inlined_call_operand.vmem [shape: f32[8,8,128], index: 0, kind: input, shape index: {}]   ;;  %s729_s1 = inlined_call_operand.vmem [shape: f32[8,128], index: 1, kind: input, shape index: {}]   ;;  %s730_s2 = inlined_call_operand.vmem [shape: f32[128,128], index: 2, kind: input, shape index: {}]   ;;  %s731_s3 = inlined_call_operand.vmem [shape: f32[8,8,128], index: 3, kind: output, shape index: {0}]   ;;  %s732_s4 = inlined_call_operand.hbm [shape: f32[8,128], index: 4, kind: output, shape index: {1}]  }
   0x1   :  { %v469_v0 = vld [vmem:[%s730_s2 + $0x78] sm:$0xff]  ;;  %v474_v1 = vld [vmem:[%s730_s2 + $0x70] sm:$0xff]  ;;  %v481_v2 = vld [vmem:[%s730_s2 + $0x68] sm:$0xff] }
   0x2   :  { %41 = vmatpush.msra.mxu0 %v469_v0  ;;  %82 = vmatpush.msra.mxu1 %v469_v0  ;;  %v490_v3 = vld [vmem:[%s730_s2 + $0x60] sm:$0xff]  ;;  %v499_v4 = vld [vmem:[%s730_s2 + $0x58] sm:$0xff] }
   0x3   :  { %124 = vmatpush.msra.mxu2 %v469_v0  ;;  %166 = vmatpush.msra.mxu3 %v469_v0 }
   0x4   :  { %42 = vmatpush.msra.mxu0 %v474_v1  ;;  %83 = vmatpush.msra.mxu1 %v474_v1 }
   0x5   :  { %125 = vmatpush.msra.mxu2 %v474_v1  ;;  %167 = vmatpush.msra.mxu3 %v474_v1 }
   0x6   :  { %43 = vmatpush.msra.mxu0 %v481_v2  ;;  %84 = vmatpush.msra.mxu1 %v481_v2 }
   0x7   :  { %126 = vmatpush.msra.mxu2 %v481_v2  ;;  %168 = vmatpush.msra.mxu3 %v481_v2 }
   0x8   :  { %10 = vsyncpa [#allocation4], 0  ;;  %44 = vmatpush.msra.mxu0 %v490_v3  ;;  %85 = vmatpush.msra.mxu1 %v490_v3  ;;  %v508_v5 = vld [vmem:[%s730_s2 + $0x50] sm:$0xff]  ;;  %v517_v6 = vld [vmem:[%s730_s2 + $0x48] sm:$0xff]  ;;  %s440_s23 = smov [#allocation3]   ;;  %s372_s27 = sshll.u32 %s732_s4, 4  ;;  %s373_s27 = int_to_ptr.hbm [resolvable:$true] %s372_s27 }
   0x9   :  { %127 = vmatpush.msra.mxu2 %v490_v3  ;;  %169 = vmatpush.msra.mxu3 %v490_v3  ;;  %v526_v7 = vld [vmem:[%s730_s2 + $0x40] sm:$0xff]  ;;  %v535_v8 = vld [vmem:[%s730_s2 + $0x38] sm:$0xff]  ;;  %v544_v9 = vld [vmem:[%s730_s2 + $0x30] sm:$0xff]  ;;  %s370_s24 = sshll.u32 %s440_s23, 4  ;;  %s371_s24 = int_to_ptr.vmem [resolvable:$true] %s370_s24 }
   0xa   :  { %45 = vmatpush.msra.mxu0 %v499_v4  ;;  %86 = vmatpush.msra.mxu1 %v499_v4  ;;  %v553_v10 = vld [vmem:[%s730_s2 + $0x28] sm:$0xff]  ;;  %v562_v11 = vld [vmem:[%s730_s2 + $0x20] sm:$0xff]  ;;  %v571_v12 = vld [vmem:[%s730_s2 + $0x18] sm:$0xff] }
   0xb   :  { %128 = vmatpush.msra.mxu2 %v499_v4  ;;  %170 = vmatpush.msra.mxu3 %v499_v4  ;;  %v580_v13 = vld [vmem:[%s730_s2 + $0x10] sm:$0xff]  ;;  %v589_v14 = vld [vmem:[%s730_s2 + $0x8] sm:$0xff]  ;;  %v598_v15 = vld [vmem:[%s730_s2] sm:$0xff] }
   0xc   :  { %46 = vmatpush.msra.mxu0 %v508_v5  ;;  %87 = vmatpush.msra.mxu1 %v508_v5  ;;  %v21_v16 = vld [vmem:[%s729_s1] sm:$0xff]  ;;  %v383_v21 = vld [vmem:[%s728_s0 + $0x8] sm:$0xff]  ;;  %v385_v25 = vld [vmem:[%s728_s0 + $0x10] sm:$0xff] }
   0xd   :  { %129 = vmatpush.msra.mxu2 %v508_v5  ;;  %171 = vmatpush.msra.mxu3 %v508_v5  ;;  %v24_v17 = vld [vmem:[%s728_s0] sm:$0xff]  ;;  %v387_v29 = vld [vmem:[%s728_s0 + $0x18] sm:$0xff]  ;;  %v391_v37 = vld [vmem:[%s728_s0 + $0x28] sm:$0xff] }
   0xe   :  { %47 = vmatpush.msra.mxu0 %v517_v6  ;;  %88 = vmatpush.msra.mxu1 %v517_v6  ;;  %v389_v33 = vld [vmem:[%s728_s0 + $0x20] sm:$0xff]  ;;  %v393_v41 = vld [vmem:[%s728_s0 + $0x30] sm:$0xff]  ;;  %v395_v45 = vld [vmem:[%s728_s0 + $0x38] sm:$0xff] }
   0xf   :  { %130 = vmatpush.msra.mxu2 %v517_v6  ;;  %172 = vmatpush.msra.mxu3 %v517_v6 }
  0x10   :  { %48 = vmatpush.msra.mxu0 %v526_v7  ;;  %89 = vmatpush.msra.mxu1 %v526_v7 }
  0x11   :  { %131 = vmatpush.msra.mxu2 %v526_v7  ;;  %173 = vmatpush.msra.mxu3 %v526_v7 }
  0x12   :  { %49 = vmatpush.msra.mxu0 %v535_v8  ;;  %90 = vmatpush.msra.mxu1 %v535_v8 }
  0x13   :  { %132 = vmatpush.msra.mxu2 %v535_v8  ;;  %174 = vmatpush.msra.mxu3 %v535_v8 }
  0x14   :  { %50 = vmatpush.msra.mxu0 %v544_v9  ;;  %91 = vmatpush.msra.mxu1 %v544_v9 }
  0x15   :  { %133 = vmatpush.msra.mxu2 %v544_v9  ;;  %175 = vmatpush.msra.mxu3 %v544_v9 }
  0x16   :  { %51 = vmatpush.msra.mxu0 %v553_v10  ;;  %92 = vmatpush.msra.mxu1 %v553_v10 }
  0x17   :  { %134 = vmatpush.msra.mxu2 %v553_v10  ;;  %176 = vmatpush.msra.mxu3 %v553_v10 }
  0x18   :  { %52 = vmatpush.msra.mxu0 %v562_v11  ;;  %93 = vmatpush.msra.mxu1 %v562_v11 }
  0x19   :  { %135 = vmatpush.msra.mxu2 %v562_v11  ;;  %177 = vmatpush.msra.mxu3 %v562_v11 }
  0x1a   :  { %53 = vmatpush.msra.mxu0 %v571_v12  ;;  %94 = vmatpush.msra.mxu1 %v571_v12 }
  0x1b   :  { %136 = vmatpush.msra.mxu2 %v571_v12  ;;  %178 = vmatpush.msra.mxu3 %v571_v12 }
  0x1c   :  { %54 = vmatpush.msra.mxu0 %v580_v13  ;;  %95 = vmatpush.msra.mxu1 %v580_v13 }
  0x1d   :  { %137 = vmatpush.msra.mxu2 %v580_v13  ;;  %179 = vmatpush.msra.mxu3 %v580_v13 }
  0x1e   :  { %55 = vmatpush.msra.mxu0 %v589_v14  ;;  %96 = vmatpush.msra.mxu1 %v589_v14 }
  0x1f   :  { %138 = vmatpush.msra.mxu2 %v589_v14  ;;  %180 = vmatpush.msra.mxu3 %v589_v14 }
  0x20   :  { %56 = vmatpush.msra.mxu0 %v598_v15  ;;  %97 = vmatpush.msra.mxu1 %v598_v15 }
  0x21   :  { %57 = vmatmul.f32.vlgmr.msra.gmra.mxu0 %v21_v16  ;;  %139 = vmatpush.msra.mxu2 %v598_v15 }
  0x22   :  { %181 = vmatpush.msra.mxu3 %v598_v15  ;;  %208 = vmatpush.msrb.mxu0 %v469_v0 }
  0x23   :  { %250 = vmatpush.msrb.mxu1 %v469_v0  ;;  %292 = vmatpush.msrb.mxu2 %v469_v0 }
  0x24   :  { %209 = vmatpush.msrb.mxu0 %v474_v1  ;;  %334 = vmatpush.msrb.mxu3 %v469_v0 }
  0x25   :  { %251 = vmatpush.msrb.mxu1 %v474_v1  ;;  %293 = vmatpush.msrb.mxu2 %v474_v1 }
  0x26   :  { %210 = vmatpush.msrb.mxu0 %v481_v2  ;;  %335 = vmatpush.msrb.mxu3 %v474_v1 }
  0x27   :  { %252 = vmatpush.msrb.mxu1 %v481_v2  ;;  %294 = vmatpush.msrb.mxu2 %v481_v2 }
  0x28   :  { %211 = vmatpush.msrb.mxu0 %v490_v3  ;;  %336 = vmatpush.msrb.mxu3 %v481_v2 }
  0x29   :  { %253 = vmatpush.msrb.mxu1 %v490_v3  ;;  %295 = vmatpush.msrb.mxu2 %v490_v3 }
  0x2a   :  { %212 = vmatpush.msrb.mxu0 %v499_v4  ;;  %337 = vmatpush.msrb.mxu3 %v490_v3 }
  0x2b   :  { %254 = vmatpush.msrb.mxu1 %v499_v4  ;;  %296 = vmatpush.msrb.mxu2 %v499_v4 }
  0x2c   :  { %213 = vmatpush.msrb.mxu0 %v508_v5  ;;  %338 = vmatpush.msrb.mxu3 %v499_v4 }
  0x2d   :  { %255 = vmatpush.msrb.mxu1 %v508_v5  ;;  %297 = vmatpush.msrb.mxu2 %v508_v5 }
  0x2e   :  { %214 = vmatpush.msrb.mxu0 %v517_v6  ;;  %339 = vmatpush.msrb.mxu3 %v508_v5 }
  0x2f   :  { %256 = vmatpush.msrb.mxu1 %v517_v6  ;;  %298 = vmatpush.msrb.mxu2 %v517_v6 }
  0x30   :  { %215 = vmatpush.msrb.mxu0 %v526_v7  ;;  %340 = vmatpush.msrb.mxu3 %v517_v6 }
  0x31   :  { %257 = vmatpush.msrb.mxu1 %v526_v7  ;;  %299 = vmatpush.msrb.mxu2 %v526_v7 }
  0x32   :  { %216 = vmatpush.msrb.mxu0 %v535_v8  ;;  %341 = vmatpush.msrb.mxu3 %v526_v7 }
  0x33   :  { %258 = vmatpush.msrb.mxu1 %v535_v8  ;;  %300 = vmatpush.msrb.mxu2 %v535_v8 }
  0x34   :  { %217 = vmatpush.msrb.mxu0 %v544_v9  ;;  %342 = vmatpush.msrb.mxu3 %v535_v8 }
  0x35   :  { %259 = vmatpush.msrb.mxu1 %v544_v9  ;;  %301 = vmatpush.msrb.mxu2 %v544_v9 }
  0x36   :  { %218 = vmatpush.msrb.mxu0 %v553_v10  ;;  %343 = vmatpush.msrb.mxu3 %v544_v9 }
  0x37   :  { %260 = vmatpush.msrb.mxu1 %v553_v10  ;;  %302 = vmatpush.msrb.mxu2 %v553_v10 }
  0x38   :  { %219 = vmatpush.msrb.mxu0 %v562_v11  ;;  %344 = vmatpush.msrb.mxu3 %v553_v10 }
  0x39   :  { %261 = vmatpush.msrb.mxu1 %v562_v11  ;;  %303 = vmatpush.msrb.mxu2 %v562_v11 }
  0x3a   :  { %220 = vmatpush.msrb.mxu0 %v571_v12  ;;  %345 = vmatpush.msrb.mxu3 %v562_v11 }
  0x3b   :  { %262 = vmatpush.msrb.mxu1 %v571_v12  ;;  %304 = vmatpush.msrb.mxu2 %v571_v12 }
  0x3c   :  { %221 = vmatpush.msrb.mxu0 %v580_v13  ;;  %346 = vmatpush.msrb.mxu3 %v571_v12 }
  0x3d   :  { %263 = vmatpush.msrb.mxu1 %v580_v13  ;;  %305 = vmatpush.msrb.mxu2 %v580_v13 }
  0x3e   :  { %222 = vmatpush.msrb.mxu0 %v589_v14  ;;  %347 = vmatpush.msrb.mxu3 %v580_v13 }
  0x3f   :  { %264 = vmatpush.msrb.mxu1 %v589_v14  ;;  %306 = vmatpush.msrb.mxu2 %v589_v14 }
  0x40   :  { %223 = vmatpush.msrb.mxu0 %v598_v15  ;;  %348 = vmatpush.msrb.mxu3 %v589_v14 }
  0x41   :  { %265 = vmatpush.msrb.mxu1 %v598_v15  ;;  %307 = vmatpush.msrb.mxu2 %v598_v15 }
  0x42   :  { %349 = vmatpush.msrb.mxu3 %v598_v15 }
  0x9e   :  { %v58_v18 = vpop.f32.mrf.mxu0 }
  0x9f   :  { %v61_v19 = vadd.f32 %v58_v18, %v24_v17 }
  0xa1   :  { %398 = vtanh.f32 %v61_v19 }
  0xa7   :  { %v399_v20 = vpop.eup %398 }
  0xa8   :  { %63 = vst [vmem:[%s731_s3] sm:$0xff] %v399_v20  ;;  %98 = vmatmul.f32.vlgmr.msra.gmra.mxu1 %v399_v20 }
 0x125   :  { %v99_v22 = vpop.f32.mrf.mxu1 }
 0x126   :  { %v102_v23 = vadd.f32 %v383_v21, %v99_v22 }
 0x128   :  { %400 = vtanh.f32 %v102_v23 }
 0x12e   :  { %v401_v24 = vpop.eup %400 }
 0x12f   :  { %384 = vst [vmem:[%s731_s3 + $0x8] sm:$0xff] %v401_v24  ;;  %140 = vmatmul.f32.vlgmr.msra.gmra.mxu2 %v401_v24 }
 0x1b2   :  { %v141_v26 = vpop.f32.mrf.mxu2 }
 0x1b3   :  { %v144_v27 = vadd.f32 %v385_v25, %v141_v26 }
 0x1b5   :  { %402 = vtanh.f32 %v144_v27 }
 0x1bb   :  { %v403_v28 = vpop.eup %402 }
 0x1bc   :  { %386 = vst [vmem:[%s731_s3 + $0x10] sm:$0xff] %v403_v28  ;;  %182 = vmatmul.f32.vlgmr.msra.gmra.mxu3 %v403_v28 }
 0x23f   :  { %v183_v30 = vpop.f32.mrf.mxu3 }
 0x240   :  { %v186_v31 = vadd.f32 %v387_v29, %v183_v30 }
 0x242   :  { %404 = vtanh.f32 %v186_v31 }
 0x248   :  { %v405_v32 = vpop.eup %404 }
 0x249   :  { %388 = vst [vmem:[%s731_s3 + $0x18] sm:$0xff] %v405_v32  ;;  %224 = vmatmul.f32.vlgmr.msrb.gmra.mxu0 %v405_v32 }
 0x2c6   :  { %v225_v34 = vpop.f32.mrf.mxu0 }
 0x2c7   :  { %v228_v35 = vadd.f32 %v389_v33, %v225_v34 }
 0x2c9   :  { %406 = vtanh.f32 %v228_v35 }
 0x2cf   :  { %v407_v36 = vpop.eup %406 }
 0x2d0   :  { %390 = vst [vmem:[%s731_s3 + $0x20] sm:$0xff] %v407_v36  ;;  %266 = vmatmul.f32.vlgmr.msrb.gmra.mxu1 %v407_v36 }
 0x34d   :  { %v267_v38 = vpop.f32.mrf.mxu1 }
 0x34e   :  { %v270_v39 = vadd.f32 %v391_v37, %v267_v38 }
 0x350   :  { %408 = vtanh.f32 %v270_v39 }
 0x356   :  { %v409_v40 = vpop.eup %408 }
 0x357   :  { %392 = vst [vmem:[%s731_s3 + $0x28] sm:$0xff] %v409_v40  ;;  %308 = vmatmul.f32.vlgmr.msrb.gmra.mxu2 %v409_v40 }
 0x3da   :  { %v309_v42 = vpop.f32.mrf.mxu2 }
 0x3db   :  { %v312_v43 = vadd.f32 %v393_v41, %v309_v42 }
 0x3dd   :  { %410 = vtanh.f32 %v312_v43 }
 0x3e3   :  { %v411_v44 = vpop.eup %410 }
 0x3e4   :  { %394 = vst [vmem:[%s731_s3 + $0x30] sm:$0xff] %v411_v44  ;;  %350 = vmatmul.f32.vlgmr.msrb.gmra.mxu3 %v411_v44 }
 0x467   :  { %v351_v46 = vpop.f32.mrf.mxu3 }
 0x468   :  { %v354_v47 = vadd.f32 %v395_v45, %v351_v46 }
 0x46a   :  { %412 = vtanh.f32 %v354_v47 }
 0x470   :  { %v413_v48 = vpop.eup %412 }
 0x471   :  { %396 = vst [vmem:[%s731_s3 + $0x38] sm:$0xff] %v413_v48 }
 0x472   :  { %362 = vst [vmem:[#allocation3] sm:$0xff] %v413_v48 }
 0x473   :  { %375 = dma.vmem_to_hbm [thread:$0]  %s371_s24, 128, %s373_s27, [#allocation4]  }
 0x474   :  { %438 = dma.done.wait [#allocation4], 128  }
 0x475   :  { %439 = vsyncadd [#allocation4], 4294967168 }
 0x476   :  { %382 = vsyncpa [#allocation4], 1 }

</bundles_post_ra>
